<compile_context>
chip_gen: v5e
topology: v5e:2x2
jax: 0.10.0
libtpu: 0.0.40
codegen_flags: <defaults>
</compile_context>

<pallas_src>
import functools

import jax
import jax.numpy as jnp
from jax.experimental import pallas as pl
from jax.experimental.pallas import tpu as pltpu  # noqa: F401  (TPU backend)

_LANES = 128
_SUBLANES = 8
_EPS = 1e-5


def _round_up(x, m):
    return (x + m - 1) // m * m


# --------------------------------------------------------------------------
# Kernel
# --------------------------------------------------------------------------
def _encoder_kernel(m_ref, w_ref, out_ref, *, k_pad, h_pad):
    # Packed operands:
    #   m_ref : (B, K_pad)                         activations (zero-padded cols)
    #   w_ref : (K_pad + 2*H_pad + 8, H_pad)       rows [W12 ; W3 ; W4 ; params]
    #           params rows = [b12, b3, b4, gamma, beta, 0, 0, 0]
    # All row offsets are multiples of 8 -> static slices stay tile-aligned.
    x = m_ref[...]

    r = 0
    w12 = w_ref[r:r + k_pad, :]; r += k_pad
    w3 = w_ref[r:r + h_pad, :]; r += h_pad
    w4 = w_ref[r:r + h_pad, :]; r += h_pad
    p = w_ref[r:r + 8, :]
    b12 = p[0:1, :]
    b3 = p[1:2, :]
    b4 = p[2:3, :]
    gamma = p[3:4, :]
    beta = p[4:5, :]

    # 3 serialized MXU matmuls (Linear1/2 fused in packing) + VPU/EUP tanh.
    # TODO(synk): cast matmul inputs to bf16 for the batched path (MXU rate).
    h = jnp.dot(x, w12, preferred_element_type=jnp.float32) + b12
    h = jnp.tanh(h)
    h = jnp.dot(h, w3, preferred_element_type=jnp.float32) + b3
    h = jnp.tanh(h)
    h = jnp.dot(h, w4, preferred_element_type=jnp.float32) + b4

    # BatchNorm1d (training mode): batch mean / biased batch variance.
    # Zero-padded lanes stay exactly zero (mean 0, centered 0, gamma/beta 0).
    mean = jnp.mean(h, axis=0, keepdims=True)
    centered = h - mean
    var = jnp.mean(centered * centered, axis=0, keepdims=True)
    inv_std = jax.lax.rsqrt(var + _EPS)
    out_ref[...] = centered * inv_std * gamma + beta


# --------------------------------------------------------------------------
# One-time parameter packing (per weight update, NOT per forward call)
# --------------------------------------------------------------------------
def pack_encoder_params(params):
    """Pack all weights / biases / BN params into one fp32 array.

    Returns (packed, meta). `packed` has shape (K_pad + 2*H_pad + 8, H_pad):
      rows [0, K_pad)                      : W12 = W1 @ W2   (exact fusion)
      rows [K_pad, K_pad + H_pad)          : W3
      rows [K_pad + H_pad, K_pad + 2H_pad) : W4
      last 8 rows                          : b12, b3, b4, gamma, beta, 0, 0, 0
    Feature dimension is zero-padded to a full 128-lane width.
    """
    K, H = params["w1"].shape
    K_pad = max(_round_up(K, _SUBLANES), _SUBLANES)
    H_pad = max(_round_up(H, _LANES), _LANES)

    # Exact algebraic fusion of Linear1 + Linear2 (no nonlinearity between).
    w12 = params["w1"] @ params["w2"]                   # (K, H)
    b12 = params["b1"] @ params["w2"] + params["b2"]    # (1, H)

    def pad2(a, rows, cols):
        return jnp.pad(a, ((0, rows - a.shape[0]), (0, cols - a.shape[1])))

    w12p = pad2(w12, K_pad, H_pad)
    w3p = pad2(params["w3"], H_pad, H_pad)
    w4p = pad2(params["w4"], H_pad, H_pad)
    pblk = jnp.concatenate(
        [b12, params["b3"], params["b4"], params["gamma"], params["beta"],
         jnp.zeros((3, H), jnp.float32)], axis=0)       # (8, H)
    pblk = pad2(pblk, 8, H_pad)

    packed = jnp.concatenate([w12p, w3p, w4p, pblk], axis=0)
    meta = dict(K=K, H=H, K_pad=K_pad, H_pad=H_pad)
    return packed, meta


# --------------------------------------------------------------------------
# Forward (jitted; per-call wrapper ops fuse into the XLA graph)
# --------------------------------------------------------------------------
@functools.partial(jax.jit, static_argnames=("K", "H", "K_pad", "H_pad"))
def _encoder_forward_impl(m, w_packed, *, K, H, K_pad, H_pad):
    B = m.shape[0]
    if K_pad != K:
        m = jnp.pad(m, ((0, 0), (0, K_pad - K)))
    R = w_packed.shape[0]

    kernel = functools.partial(_encoder_kernel, k_pad=K_pad, h_pad=H_pad)

    flops = 2 * B * H_pad * (K_pad + 2 * H_pad) + 10 * B * H_pad
    transcendentals = 2 * B * H_pad
    bytes_accessed = 4 * (B * K_pad + R * H_pad + B * H_pad)

    out = pl.pallas_call(
        kernel,
        out_shape=jax.ShapeDtypeStruct((B, H_pad), jnp.float32),
        grid=(),
        in_specs=[
            pl.BlockSpec((B, K_pad), lambda: (0, 0)),
            pl.BlockSpec((R, H_pad), lambda: (0, 0)),
        ],
        out_specs=pl.BlockSpec((B, H_pad), lambda: (0, 0)),
        cost_estimate=pl.CostEstimate(
            flops=flops, transcendentals=transcendentals,
            bytes_accessed=bytes_accessed),
    )(m, w_packed)

    return out[:, :H]   # drop zero lane-padding (fused under jit)


def encoder_forward(m, w_packed, meta):
    """m: (B, K) float32.  w_packed/meta: from pack_encoder_params."""
    return _encoder_forward_impl(m, w_packed, **meta)


# --------------------------------------------------------------------------
# Synthetic init + pure-JAX reference
# --------------------------------------------------------------------------
def init_params(key, K, N):
    """Deterministic synthetic init (shapes match Encoder.__init__)."""
    H = 2 * N
    keys = jax.random.split(key, 8)

    def lin(kw, kb, fan_in, fan_out):
        bound = 1.0 / jnp.sqrt(jnp.float32(fan_in))
        w = jax.random.uniform(kw, (fan_in, fan_out), jnp.float32, -bound, bound)
        b = jax.random.uniform(kb, (1, fan_out), jnp.float32, -bound, bound)
        return w, b

    w1, b1 = lin(keys[0], keys[1], K, H)
    w2, b2 = lin(keys[2], keys[3], H, H)
    w3, b3 = lin(keys[4], keys[5], H, H)
    w4, b4 = lin(keys[6], keys[7], H, H)
    gamma = jnp.ones((1, H), jnp.float32)
    beta = jnp.zeros((1, H), jnp.float32)
    return dict(w1=w1, b1=b1, w2=w2, b2=b2, w3=w3, b3=b3, w4=w4, b4=b4,
                gamma=gamma, beta=beta)


def reference_forward(m, p):
    """Pure-JAX reference (un-fused) for a sanity check."""
    h = m @ p["w1"] + p["b1"]
    h = h @ p["w2"] + p["b2"]
    h = jnp.tanh(h)
    h = h @ p["w3"] + p["b3"]
    h = jnp.tanh(h)
    h = h @ p["w4"] + p["b4"]
    mean = jnp.mean(h, axis=0, keepdims=True)
    var = jnp.mean((h - mean) ** 2, axis=0, keepdims=True)
    return (h - mean) / jnp.sqrt(var + _EPS) * p["gamma"] + p["beta"]


if __name__ == "__main__":
    K, N = 16, 16          # Encoder(K, N) -> hidden width 2*N = 32
    B = 8                  # batch

    key = jax.random.PRNGKey(0)
    k_m, k_p = jax.random.split(key)
    m = jax.random.normal(k_m, (B, K), jnp.float32)
    params = init_params(k_p, K, N)

    # Pack once (per weight update), then call the jitted forward.
    w_packed, meta = pack_encoder_params(params)
    w_packed = jax.block_until_ready(w_packed)

    out = encoder_forward(m, w_packed, meta)
    out = jax.block_until_ready(out)

    ref = reference_forward(m, params)
    assert out.shape == (B, 2 * N)
    assert jnp.allclose(out, ref, atol=1e-4, rtol=1e-4)

    print("KERNEL_OK")
</pallas_src>

<mosaic_0001>
module attributes {stable_mosaic.version = 11 : i64} {
  func.func @_encoder_kernel(%arg0: memref<8x16xf32, #tpu.memory_space<vmem>>, %arg1: memref<280x128xf32, #tpu.memory_space<vmem>>, %arg2: memref<8x128xf32, #tpu.memory_space<vmem>>) attributes {dimension_semantics = [], scalar_prefetch = 0 : i64, scratch_operands = 0 : i64, tpu.core_type = #tpu.core_type<tc>} {
    %c0 = arith.constant 0 : index
    %c0_0 = arith.constant 0 : index
    %0 = vector.load %arg0[%c0, %c0_0] : memref<8x16xf32, #tpu.memory_space<vmem>>, vector<8x16xf32>
    %c0_1 = arith.constant 0 : index
    %c0_2 = arith.constant 0 : index
    %1 = vector.load %arg1[%c0_1, %c0_2] : memref<280x128xf32, #tpu.memory_space<vmem>>, vector<16x128xf32>
    %c16 = arith.constant 16 : index
    %c0_3 = arith.constant 0 : index
    %2 = vector.load %arg1[%c16, %c0_3] : memref<280x128xf32, #tpu.memory_space<vmem>>, vector<128x128xf32>
    %c144 = arith.constant 144 : index
    %c0_4 = arith.constant 0 : index
    %3 = vector.load %arg1[%c144, %c0_4] : memref<280x128xf32, #tpu.memory_space<vmem>>, vector<128x128xf32>
    %c272 = arith.constant 272 : index
    %c0_5 = arith.constant 0 : index
    %4 = vector.load %arg1[%c272, %c0_5] : memref<280x128xf32, #tpu.memory_space<vmem>>, vector<8x128xf32>
    %5 = vector.extract_strided_slice %4 {offsets = [0, 0], sizes = [1, 128], strides = [1, 1]} : vector<8x128xf32> to vector<1x128xf32>
    %6 = vector.extract_strided_slice %4 {offsets = [1, 0], sizes = [1, 128], strides = [1, 1]} : vector<8x128xf32> to vector<1x128xf32>
    %7 = vector.extract_strided_slice %4 {offsets = [2, 0], sizes = [1, 128], strides = [1, 1]} : vector<8x128xf32> to vector<1x128xf32>
    %8 = vector.extract_strided_slice %4 {offsets = [3, 0], sizes = [1, 128], strides = [1, 1]} : vector<8x128xf32> to vector<1x128xf32>
    %9 = vector.extract_strided_slice %4 {offsets = [4, 0], sizes = [1, 128], strides = [1, 1]} : vector<8x128xf32> to vector<1x128xf32>
    %cst = arith.constant dense<0.000000e+00> : vector<8x128xf32>
    %10 = tpu.matmul %0, %1, %cst {dimension_numbers = #tpu.dot_dimension_numbers<[1], [0], [0], [1], [0, 0, 1, 1], [], []>} : vector<8x16xf32>, vector<16x128xf32>, vector<8x128xf32> -> vector<8x128xf32>
    %11 = vector.broadcast %5 : vector<1x128xf32> to vector<8x128xf32>
    %12 = arith.addf %10, %11 : vector<8x128xf32>
    %13 = math.tanh %12 : vector<8x128xf32>
    %cst_6 = arith.constant dense<0.000000e+00> : vector<8x128xf32>
    %14 = tpu.matmul %13, %2, %cst_6 {dimension_numbers = #tpu.dot_dimension_numbers<[1], [0], [0], [1], [0, 0, 1, 1], [], []>} : vector<8x128xf32>, vector<128x128xf32>, vector<8x128xf32> -> vector<8x128xf32>
    %15 = vector.broadcast %6 : vector<1x128xf32> to vector<8x128xf32>
    %16 = arith.addf %14, %15 : vector<8x128xf32>
    %17 = math.tanh %16 : vector<8x128xf32>
    %cst_7 = arith.constant dense<0.000000e+00> : vector<8x128xf32>
    %18 = tpu.matmul %17, %3, %cst_7 {dimension_numbers = #tpu.dot_dimension_numbers<[1], [0], [0], [1], [0, 0, 1, 1], [], []>} : vector<8x128xf32>, vector<128x128xf32>, vector<8x128xf32> -> vector<8x128xf32>
    %19 = vector.broadcast %7 : vector<1x128xf32> to vector<8x128xf32>
    %20 = arith.addf %18, %19 : vector<8x128xf32>
    %cst_8 = arith.constant dense<0.000000e+00> : vector<128xf32>
    %21 = vector.multi_reduction <add>, %20, %cst_8 [0] : vector<8x128xf32> to vector<128xf32>
    %22 = vector.shape_cast %21 : vector<128xf32> to vector<1x128xf32>
    %cst_9 = arith.constant 8.000000e+00 : f32
    %23 = vector.broadcast %cst_9 : f32 to vector<1x128xf32>
    %24 = arith.divf %22, %23 : vector<1x128xf32>
    %25 = vector.broadcast %24 : vector<1x128xf32> to vector<8x128xf32>
    %26 = arith.subf %20, %25 : vector<8x128xf32>
    %27 = arith.mulf %26, %26 : vector<8x128xf32>
    %cst_10 = arith.constant dense<0.000000e+00> : vector<128xf32>
    %28 = vector.multi_reduction <add>, %27, %cst_10 [0] : vector<8x128xf32> to vector<128xf32>
    %29 = vector.shape_cast %28 : vector<128xf32> to vector<1x128xf32>
    %cst_11 = arith.constant 8.000000e+00 : f32
    %30 = vector.broadcast %cst_11 : f32 to vector<1x128xf32>
    %31 = arith.divf %29, %30 : vector<1x128xf32>
    %cst_12 = arith.constant 9.99999974E-6 : f32
    %32 = vector.broadcast %cst_12 : f32 to vector<1x128xf32>
    %33 = arith.addf %31, %32 : vector<1x128xf32>
    %34 = math.rsqrt %33 : vector<1x128xf32>
    %35 = vector.broadcast %34 : vector<1x128xf32> to vector<8x128xf32>
    %36 = arith.mulf %26, %35 : vector<8x128xf32>
    %37 = vector.broadcast %8 : vector<1x128xf32> to vector<8x128xf32>
    %38 = arith.mulf %36, %37 : vector<8x128xf32>
    %39 = vector.broadcast %9 : vector<1x128xf32> to vector<8x128xf32>
    %40 = arith.addf %38, %39 : vector<8x128xf32>
    %c0_13 = arith.constant 0 : index
    %c0_14 = arith.constant 0 : index
    %41 = vector.load %arg2[%c0_13, %c0_14] : memref<8x128xf32, #tpu.memory_space<vmem>>, vector<8x128xf32>
    tpu.vector_store %arg2[%c0_13, %c0_14], %40 {strides = array<i32>} : memref<8x128xf32, #tpu.memory_space<vmem>>, vector<8x128xf32>,
    return
  }
}

</mosaic_0001>

<bundles_post_ra>
// kernel: _encoder_forward_impl.1
= control target key start
LH: loop header
LB: loop body
LE: loop exit
PB: predicated region body
PF: predicated region fallthrough
CT: control target
= control target key end

     0   :  { %7 = vsyncpa [#allocation3], 0  ;;  %s335_s0 = inlined_call_operand.hbm [shape: f32[8,16], index: 0, kind: input, shape index: {}]   ;;  %s336_s1 = inlined_call_operand.hbm [shape: f32[280,128], index: 1, kind: input, shape index: {}]   ;;  %s337_s2 = inlined_call_operand.hbm [shape: f32[8,128], index: 2, kind: output, shape index: {}]  }
   0x1   :  { %8 = vsyncpa [#allocation6], 0 }
   0x2   :  { %9 = vsyncpa [#allocation4], 0  ;;  %s15_s11 = sshll.u32 %s335_s0, 4  ;;  %s298_s12 = smov [#allocation2]   ;;  %s16_s11 = int_to_ptr.hbm [resolvable:$true] %s15_s11 }
   0x3   :  { %s17_s13 = sshll.u32 %s298_s12, 4  ;;  %s25_s16 = sshll.u32 %s336_s1, 4  ;;  %s18_s13 = int_to_ptr.vmem [resolvable:$true] %s17_s13  ;;  %s26_s16 = int_to_ptr.hbm [resolvable:$true] %s25_s16 }
   0x4   :  { %20 = dma.hbm_to_vmem [thread:$0]  %s16_s11, 128, %s18_s13, [#allocation3]  }
   0x5   :  { %s299_s17 = smov [#allocation5]   ;;  %s300_s19 = smov 128  }
   0x6   :  { %s27_s18 = sshll.u32 %s299_s17, 4  ;;  %s301_s20 = smov 8   ;;  %s28_s18 = int_to_ptr.vmem [resolvable:$true] %s27_s18 }
   0x7   :  { %33 = dma.hbm_to_vmem [thread:$0]  %s26_s16, 4480, %s28_s18, [#allocation6], %s300_s19, %s300_s19, %s301_s20  }
   0x8   :  { %292 = dma.done.wait [#allocation3], 128  }
   0x9   :  { %293 = vsyncadd [#allocation3], 4294967168 }
   0xa   :  { %294 = dma.done.wait [#allocation6], 4480  }
   0xb   :  { %295 = vsyncadd [#allocation6], 4294962816  ;;  %v44_v0 = vld [vmem:[#allocation5 + $0x8] sm:$0xff]  ;;  %v43_v1 = vld [vmem:[#allocation5] sm:$0xff]  ;;  %vm79_vm0 = vcmask 130048   ;;  %v302_v44 = vmov 8.0  }
   0xc   :  { %97 = vmatpush.msra.mxu0 %v44_v0  ;;  %v42_v2 = vld [vmem:[#allocation2] sm:$0xff]  ;;  %v60_v3 = vld [vmem:[#allocation5 + $0x88] sm:$0xff]  ;;  %v59_v4 = vld [vmem:[#allocation5 + $0x80] sm:$0xff]  ;;  %s303_s0 = smov [#allocation7]   ;;  %s194_s23 = sshll.u32 %s337_s2, 4  ;;  %s195_s23 = int_to_ptr.hbm [resolvable:$true] %s194_s23 }
   0xd   :  { %105 = vmatpush.msra.mxu1 %v60_v3  ;;  %v58_v5 = vld [vmem:[#allocation5 + $0x78] sm:$0xff]  ;;  %v57_v6 = vld [vmem:[#allocation5 + $0x70] sm:$0xff]  ;;  %v56_v7 = vld [vmem:[#allocation5 + $0x68] sm:$0xff]  ;;  %s192_s1 = sshll.u32 %s303_s0, 4  ;;  %s193_s1 = int_to_ptr.vmem [resolvable:$true] %s192_s1 }
   0xe   :  { %98 = vmatpush.msra.mxu0 %v43_v1  ;;  %v55_v8 = vld [vmem:[#allocation5 + $0x60] sm:$0xff]  ;;  %v54_v9 = vld [vmem:[#allocation5 + $0x58] sm:$0xff]  ;;  %v53_v10 = vld [vmem:[#allocation5 + $0x50] sm:$0xff] }
   0xf   :  { %205 = vmatmul.msk.f32.vlgmr.msra.gmra.mxu0 %vm79_vm0, %v42_v2  ;;  %106 = vmatpush.msra.mxu1 %v59_v4  ;;  %v52_v11 = vld [vmem:[#allocation5 + $0x48] sm:$0xff]  ;;  %v51_v12 = vld [vmem:[#allocation5 + $0x40] sm:$0xff]  ;;  %v50_v13 = vld [vmem:[#allocation5 + $0x38] sm:$0xff] }
  0x10   :  { %v49_v14 = vld [vmem:[#allocation5 + $0x30] sm:$0xff]  ;;  %v48_v15 = vld [vmem:[#allocation5 + $0x28] sm:$0xff]  ;;  %v47_v16 = vld [vmem:[#allocation5 + $0x20] sm:$0xff] }
  0x11   :  { %107 = vmatpush.msra.mxu1 %v58_v5  ;;  %v46_v17 = vld [vmem:[#allocation5 + $0x18] sm:$0xff]  ;;  %v45_v18 = vld [vmem:[#allocation5 + $0x10] sm:$0xff]  ;;  %v76_v19 = vld [vmem:[#allocation5 + $0x108] sm:$0xff] }
  0x12   :  { %v75_v20 = vld [vmem:[#allocation5 + $0x100] sm:$0xff]  ;;  %127 = vmatpush.msra.mxu2 %v76_v19  ;;  %v74_v21 = vld [vmem:[#allocation5 + $0xf8] sm:$0xff]  ;;  %v73_v22 = vld [vmem:[#allocation5 + $0xf0] sm:$0xff] }
  0x13   :  { %108 = vmatpush.msra.mxu1 %v57_v6  ;;  %v72_v23 = vld [vmem:[#allocation5 + $0xe8] sm:$0xff]  ;;  %v71_v24 = vld [vmem:[#allocation5 + $0xe0] sm:$0xff]  ;;  %v70_v25 = vld [vmem:[#allocation5 + $0xd8] sm:$0xff] }
  0x14   :  { %128 = vmatpush.msra.mxu2 %v75_v20  ;;  %v69_v26 = vld [vmem:[#allocation5 + $0xd0] sm:$0xff]  ;;  %v68_v27 = vld [vmem:[#allocation5 + $0xc8] sm:$0xff]  ;;  %v67_v29 = vld [vmem:[#allocation5 + $0xc0] sm:$0xff] }
  0x15   :  { %109 = vmatpush.msra.mxu1 %v56_v7  ;;  %v325_v28 = vld [vmem:[#allocation5 + $0x110] sm:$0xff]  ;;  %v66_v30 = vld [vmem:[#allocation5 + $0xb8] sm:$0xff]  ;;  %v64_v36 = vld [vmem:[#allocation5 + $0xa8] sm:$0xff] }
  0x16   :  { %129 = vmatpush.msra.mxu2 %v74_v21  ;;  %v78_v31 = vperm.slane %v325_v28, 0  ;;  %v65_v35 = vld [vmem:[#allocation5 + $0xb0] sm:$0xff]  ;;  %v63_v37 = vld [vmem:[#allocation5 + $0xa0] sm:$0xff]  ;;  %v62_v38 = vld [vmem:[#allocation5 + $0x98] sm:$0xff]  ;;  %v104_v40 = vperm.slane %v325_v28, 1  ;;  %v126_v47 = vperm.slane %v325_v28, 2 }
  0x17   :  { %110 = vmatpush.msra.mxu1 %v55_v8  ;;  %v61_v39 = vld [vmem:[#allocation5 + $0x90] sm:$0xff] }
  0x18   :  { %130 = vmatpush.msra.mxu2 %v73_v22 }
  0x19   :  { %111 = vmatpush.msra.mxu1 %v54_v9 }
  0x1a   :  { %131 = vmatpush.msra.mxu2 %v72_v23 }
  0x1b   :  { %112 = vmatpush.msra.mxu1 %v53_v10 }
  0x1c   :  { %132 = vmatpush.msra.mxu2 %v71_v24 }
  0x1d   :  { %113 = vmatpush.msra.mxu1 %v52_v11 }
  0x1e   :  { %133 = vmatpush.msra.mxu2 %v70_v25 }
  0x1f   :  { %114 = vmatpush.msra.mxu1 %v51_v12 }
  0x20   :  { %134 = vmatpush.msra.mxu2 %v69_v26 }
  0x21   :  { %115 = vmatpush.msra.mxu1 %v50_v13  ;;  %v182_v13 = vperm.slane %v325_v28, 3 }
  0x22   :  { %135 = vmatpush.msra.mxu2 %v68_v27 }
  0x23   :  { %116 = vmatpush.msra.mxu1 %v49_v14 }
  0x24   :  { %136 = vmatpush.msra.mxu2 %v67_v29 }
  0x25   :  { %117 = vmatpush.msra.mxu1 %v48_v15 }
  0x26   :  { %137 = vmatpush.msra.mxu2 %v66_v30 }
  0x27   :  { %118 = vmatpush.msra.mxu1 %v47_v16  ;;  %v184_v16 = vperm.slane %v325_v28, 4 }
  0x28   :  { %138 = vmatpush.msra.mxu2 %v65_v35 }
  0x29   :  { %119 = vmatpush.msra.mxu1 %v46_v17 }
  0x2a   :  { %139 = vmatpush.msra.mxu2 %v64_v36 }
  0x2b   :  { %120 = vmatpush.msra.mxu1 %v45_v18 }
  0x2c   :  { %140 = vmatpush.msra.mxu2 %v63_v37 }
  0x2e   :  { %141 = vmatpush.msra.mxu2 %v62_v38 }
  0x30   :  { %142 = vmatpush.msra.mxu2 %v61_v39 }
  0x8c   :  { %v100_v32 = vpop.f32.mrf.mxu0 }
  0x8d   :  { %v101_v33 = vadd.f32 %v100_v32, %v78_v31 }
  0x8f   :  { %212 = vtanh.f32 %v101_v33 }
  0x95   :  { %v213_v34 = vpop.eup %212 }
  0x96   :  { %121 = vmatmul.f32.vlgmr.msra.gmra.mxu1 %v213_v34 }
 0x113   :  { %v122_v41 = vpop.f32.mrf.mxu1 }
 0x114   :  { %v123_v42 = vadd.f32 %v122_v41, %v104_v40 }
 0x116   :  { %214 = vtanh.f32 %v123_v42 }
 0x117   :  { %216 = vrcp.f32 %v302_v44 }
 0x11c   :  { %v215_v43 = vpop.eup %214 }
 0x11d   :  { %143 = vmatmul.f32.vlgmr.msra.gmra.mxu2 %v215_v43  ;;  %v217_v45 = vpop.eup %216 }
 0x11e   :  { %v154_v46 = vmul.f32 8.0, %v217_v45  ;;  %vm158_vm1 = vweird.f32 %v217_v45 }
 0x120   :  { %v155_v49 = vsub.f32 1.0, %v154_v46 }
 0x122   :  { %v156_v52 = vmul.f32 %v217_v45, %v155_v49 }
 0x124   :  { %v157_v55 = vadd.f32 %v217_v45, %v156_v52 }
 0x126   :  { %v159_v58 = vsel %vm158_vm1, %v217_v45, %v157_v55 }
 0x1a0   :  { %v144_v48 = vpop.f32.mrf.mxu2 }
 0x1a1   :  { %v145_v50 = vadd.f32 %v144_v48, %v126_v47 }
 0x1a3   :  { %v147_v51 = vrot.slane %v145_v50, 4 }
 0x1a5   :  { %v148_v53 = vadd.f32 %v147_v51, %v145_v50 }
 0x1a7   :  { %v149_v54 = vrot.slane %v148_v53, 2 }
 0x1a9   :  { %v150_v56 = vadd.f32 %v149_v54, %v148_v53 }
 0x1ab   :  { %v151_v57 = vrot.slane %v150_v56, 1 }
 0x1ad   :  { %v152_v59 = vadd.f32 %v151_v57, %v150_v56 }
 0x1af   :  { %v160_v60 = vmul.f32 %v159_v58, %v152_v59 }
 0x1b1   :  { %v161_v61 = vsub.f32 %v145_v50, %v160_v60 }
 0x1b3   :  { %v162_v62 = vmul.f32 %v161_v61, %v161_v61 }
 0x1b5   :  { %v163_v63 = vrot.slane %v162_v62, 4 }
 0x1b7   :  { %v164_v0 = vadd.f32 %v163_v63, %v162_v62 }
 0x1b9   :  { %v165_v1 = vrot.slane %v164_v0, 2 }
 0x1bb   :  { %v166_v2 = vadd.f32 %v165_v1, %v164_v0 }
 0x1bd   :  { %v167_v3 = vrot.slane %v166_v2, 1 }
 0x1bf   :  { %v168_v4 = vadd.f32 %v167_v3, %v166_v2 }
 0x1c1   :  { %v169_v5 = vmul.f32 %v168_v4, %v159_v58 }
 0x1c3   :  { %v170_v6 = vadd.f32 1e-05, %v169_v5 }
 0x1c5   :  { %218 = vrsqrt.f32 %v170_v6  ;;  %vm177_vm3 = vweird.f32 %v170_v6 }
 0x1cb   :  { %v219_v7 = vpop.eup %218 }
 0x1cc   :  { %v172_v8 = vmul.f32 %v219_v7, %v170_v6  ;;  %vm178_vm2 = vweird.f32 %v219_v7 }
 0x1cd   :  { %vm179_vm4 = vmor %vm177_vm3, %vm178_vm2 }
 0x1ce   :  { %v173_v9 = vmul.f32 %v219_v7, %v172_v8 }
 0x1d0   :  { %v174_v10 = vmul.f32 0.5, %v173_v9 }
 0x1d2   :  { %v175_v11 = vsub.f32 1.5, %v174_v10 }
 0x1d4   :  { %v176_v12 = vmul.f32 %v219_v7, %v175_v11 }
 0x1d6   :  { %v180_v14 = vsel %vm179_vm4, %v219_v7, %v176_v12 }
 0x1d7   :  { %v181_v15 = vmul.f32 %v180_v14, %v161_v61 }
 0x1d9   :  { %v183_v17 = vmul.f32 %v182_v13, %v181_v15 }
 0x1db   :  { %v185_v18 = vadd.f32 %v184_v16, %v183_v17 }
 0x1dd   :  { %186 = vst [vmem:[#allocation7] sm:$0xff] %v185_v18 }
 0x1de   :  { %197 = dma.vmem_to_hbm [thread:$0]  %s193_s1, 128, %s195_s23, [#allocation4]  }
 0x1df   :  { %296 = dma.done.wait [#allocation4], 128  }
 0x1e0   :  { %297 = vsyncadd [#allocation4], 4294967168 }
 0x1e1   :  { %202 = vsyncpa [#allocation3], 1 }
 0x1e2   :  { %203 = vsyncpa [#allocation6], 1 }
 0x1e3   :  { %204 = vsyncpa [#allocation4], 1 }

</bundles_post_ra>
